<compile_context>
chip_gen: v6e
topology: v6e:2x2x1
jax: 0.10.0
libtpu: 0.0.40
codegen_flags: <defaults>
</compile_context>

<pallas_src>
import functools

import jax
import jax.numpy as jnp
from jax.experimental import pallas as pl
from jax.experimental.pallas import tpu as pltpu


def _centered_kernel(x_ref, o_ref, *, inv_d):
    x = x_ref[...]
    # f32 row sum (XLU reduce) without materializing an f32 copy of the tile.
    row_sum = jnp.sum(x, axis=-1, keepdims=True, dtype=jnp.float32)
    mean = (row_sum * inv_d).astype(x.dtype)          # (tm, 1) broadcast
    o_ref[...] = x - mean


def _vmem_capacity_bytes() -> int:
    try:
        return int(pltpu.get_tpu_info().vmem_capacity_bytes)
    except Exception:
        return 64 << 20  # conservative (v7x has 64 MiB per TensorCore)


def _pick_tm(n_rows: int, d: int, dtype, sub: int) -> int:
    """Row tile that fits VMEM, capped at 1024, with >= 4 grid steps if possible.

    Returns 0 if even a `sub`-row tile does not fit the VMEM budget.
    """
    itemsize = jnp.dtype(dtype).itemsize
    budget = int(_vmem_capacity_bytes() * 0.5)
    # Double-buffered input + output tiles in the native dtype (the kernel does
    # NOT materialize an f32 copy of the tile), plus a tiny per-row f32 sum.
    per_row_bytes = 4 * itemsize * d + 8
    tm = (budget // per_row_bytes) // sub * sub
    if tm < sub:
        return 0
    # 512-1024 rows already saturate HBM BW; larger tiles only hurt pipeline
    # overlap / VMEM pressure and lengthen compile.
    tm = min(tm, 1024)
    # Aim for >= 4 grid steps (>= 2 per TensorCore on v7x under "parallel"
    # dimension semantics) so the software pipeline has work to overlap.
    if n_rows >= 4 * sub:
        tm = min(tm, max(sub, (n_rows // 4) // sub * sub))
    elif n_rows > sub:
        tm = min(tm, max(sub, (n_rows // 2) // sub * sub))
    else:
        tm = sub
    return tm


def centered_layer(x: jax.Array, *, tm: int | None = None) -> jax.Array:
    """Y = X - X.mean(axis=-1, keepdims=True); X is (N, D)."""
    N, D = x.shape
    itemsize = jnp.dtype(x.dtype).itemsize
    # Sublane granularity: 8 rows for 32-bit, 16 for 16-bit, 32 for 8-bit.
    sub = max(8, 32 // itemsize)

    if tm is None:
        tm = _pick_tm(N, D, x.dtype, sub)
    else:
        tm = max(sub, (tm // sub) * sub)
    if tm == 0:
        # TODO(synk): for pathologically wide rows, split the feature axis over
        # a second ("arbitrary") grid dim with a resident per-row f32 sum
        # accumulator; plain-JAX fallback for now.
        return x - jnp.mean(x, axis=-1, keepdims=True)

    grid = (pl.cdiv(N, tm),)

    # Scoped VMEM: double-buffered in + out tiles (native dtype) + headroom.
    cap = _vmem_capacity_bytes()
    needed = 4 * tm * D * itemsize + (2 << 20)
    vmem_limit = min(int(cap * 0.9), max(needed, 32 << 20))

    kernel = functools.partial(_centered_kernel, inv_d=1.0 / D)

    return pl.pallas_call(
        kernel,
        out_shape=jax.ShapeDtypeStruct((N, D), x.dtype),
        grid_spec=pltpu.PrefetchScalarGridSpec(
            num_scalar_prefetch=0,
            grid=grid,
            # Block spans the FULL feature axis (required for a correct
            # per-row sum without host-side padding).
            in_specs=[pl.BlockSpec((tm, D), lambda i: (i, 0))],
            out_specs=pl.BlockSpec((tm, D), lambda i: (i, 0)),
        ),
        compiler_params=pltpu.CompilerParams(
            dimension_semantics=("parallel",),
            vmem_limit_bytes=vmem_limit,
        ),
    )(x)


if __name__ == "__main__":
    # CenteredLayer has no parameters (__init__ defines none); input is 2-D.
    key = jax.random.PRNGKey(0)
    N, D = 16, 128
    x = jax.random.normal(key, (N, D), dtype=jnp.float32)

    y = jax.block_until_ready(centered_layer(x))
    y_ref = x - jnp.mean(x, axis=-1, keepdims=True)
    assert y.shape == x.shape and y.dtype == x.dtype
    assert jnp.allclose(y, y_ref, atol=1e-5, rtol=1e-5)
    # Row means of the output should be ~0.
    assert jnp.max(jnp.abs(jnp.mean(y, axis=-1))) < 1e-5

    # Ragged shape exercising the masked tail path (N % tm != 0, D % 128 != 0)
    # with no host-side padding or slicing.
    x2 = jax.random.normal(jax.random.PRNGKey(1), (13, 100), dtype=jnp.float32)
    y2 = jax.block_until_ready(centered_layer(x2))
    y2_ref = x2 - jnp.mean(x2, axis=-1, keepdims=True)
    assert y2.shape == x2.shape and y2.dtype == x2.dtype
    assert jnp.allclose(y2, y2_ref, atol=1e-5, rtol=1e-5)

    print("KERNEL_OK")
</pallas_src>

<mosaic_0001>
module attributes {stable_mosaic.version = 11 : i64} {
  func.func @_centered_kernel(%arg0: i32, %arg1: memref<8x128xf32, #tpu.memory_space<vmem>>, %arg2: memref<8x128xf32, #tpu.memory_space<vmem>>) attributes {dimension_semantics = [#tpu.dimension_semantics<parallel>], iteration_bounds = array<i64: 2>, scalar_prefetch = 0 : i64, scratch_operands = 0 : i64, tpu.core_type = #tpu.core_type<tc>, window_params = [{transform_indices = @transform_0, window_bounds = array<i64: 8, 128>}, {transform_indices = @transform_1, window_bounds = array<i64: 8, 128>}]} {
    %c0 = arith.constant 0 : index
    %c0_0 = arith.constant 0 : index
    %0 = vector.load %arg1[%c0, %c0_0] : memref<8x128xf32, #tpu.memory_space<vmem>>, vector<8x128xf32>
    %cst = arith.constant dense<0.000000e+00> : vector<8xf32>
    %1 = vector.multi_reduction <add>, %0, %cst [1] : vector<8x128xf32> to vector<8xf32>
    %2 = vector.shape_cast %1 : vector<8xf32> to vector<8x1xf32>
    %cst_1 = arith.constant 7.812500e-03 : f32
    %3 = vector.broadcast %cst_1 : f32 to vector<8x1xf32>
    %4 = arith.mulf %2, %3 : vector<8x1xf32>
    %5 = vector.broadcast %4 : vector<8x1xf32> to vector<8x128xf32>
    %6 = arith.subf %0, %5 : vector<8x128xf32>
    %c0_2 = arith.constant 0 : index
    %c0_3 = arith.constant 0 : index
    %7 = vector.load %arg2[%c0_2, %c0_3] : memref<8x128xf32, #tpu.memory_space<vmem>>, vector<8x128xf32>
    tpu.vector_store %arg2[%c0_2, %c0_3], %6 {strides = array<i32>} : memref<8x128xf32, #tpu.memory_space<vmem>>, vector<8x128xf32>,
    return
  }
  func.func @transform_0(%arg0: i32) -> (i32, i32) {
    %c0_i32 = arith.constant 0 : i32
    %c0_i32_0 = arith.constant 0 : i32
    return %arg0, %c0_i32 : i32, i32
  }
  func.func @transform_1(%arg0: i32) -> (i32, i32) {
    %c0_i32 = arith.constant 0 : i32
    %c0_i32_0 = arith.constant 0 : i32
    return %arg0, %c0_i32 : i32, i32
  }
}

</mosaic_0001>

<bundles_post_ra>
// kernel: tpu_custom_call.1
= control target key start
LH: loop header
LB: loop body
LE: loop exit
PB: predicated region body
PF: predicated region fallthrough
CT: control target
= control target key end

     0   :  { %6 = vsyncpa [#allocation3], 0  ;;  %s527_s0 = inlined_call_operand.hbm [shape: f32[16,128], index: 0, kind: input, shape index: {}]   ;;  %s528_s1 = inlined_call_operand.hbm [shape: f32[16,128], index: 1, kind: output, shape index: {}]  }
   0x1   :  { %8 = vsyncpa [#allocation3 + $0x1], 0 }
   0x2   :  { %9 = vsyncpa [#allocation4], 0 }
   0x3   :  { %11 = vsyncpa [#allocation4 + $0x1], 0  ;;  %s386_s6 = smov 0   ;;  %s388_s7 = smov 0  }
   0x4   :  { %s390_s8 = smov 0   ;;  %s392_s9 = smov 0  }
   0x5 LB: > { %s407_s10 = sadd.s32 4294967295, %s372_s9   ;;  %s222_s11 = sadd.s32 4294967294, %s372_s9   ;;  %s372_s9 = sphi %s392_s9, %s545_s9   ;;  %s368_s8 = sphi %s390_s8, %s544_s8   ;;  %s364_s7 = sphi %s388_s7, %s543_s7   ;;  %s360_s6 = sphi %s386_s6, %s542_s6  }
   0x6   : > { %s411_s12 = sadd.s32 1, %s372_s9   ;;  %s24_s13 = sadd.s32 1, %s368_s8 }
   0x7   : > { %s21_s14 = ssub.s32 %s372_s9, %s411_s12  ;;  %p31_p0 = scmp.ne.s32.totalorder %s368_s8, %s364_s7 }
   0x8   : > { %p22_p1 = scmp.eq.s32.totalorder %s21_s14, 0  ;;  %p32_p2 = scmp.eq.s32.totalorder %s372_s9, 0 }
   0x9   : > { %p37_p3 = scmp.ne.s32.totalorder %s364_s7, %s360_s6  ;;  %p38_p4 = scmp.eq.s32.totalorder %s407_s10, 0 }
   0xa   : > { %s423_s15 = scalar_select %p22_p1, %s368_s8, %s24_s13  }
   0xb   : > { %p425_p5 = por %p32_p2, %p31_p0  ;;  %p429_p6 = por %p38_p4, %p37_p3 }
   0xc   : > { %p61_p7 = scmp.eq.s32.totalorder %s407_s10, 1  ;;  %p67_p8 = scmp.eq.s32.totalorder %s222_s11, 1 }
   0xd   : > { %s532_s17 = scalar_select %p429_p6, 1, 0 }
   0xe   : > { %p246_p10 = scmp.lt.s32.totalorder %s372_s9, 2  ;;  %p436_p11 = por %p61_p7, %p31_p0 }
   0xf   : > { %p440_p12 = por %p67_p8, %p37_p3  ;;  %s87_s20 = sand.u32 1, %s368_s8  }
  0x10   : > { %s533_s18 = scalar_select %p436_p11, 1, 0 }
  0x11   : > { %s534_s19 = scalar_select %p440_p12, 1, 0 }
  0x12   : > { %s226_s21 = sshll.u32 %s372_s9, 7  ;;  %s225_s22 = sshll.u32 %s87_s20, 3 }
  0x13   : > { %s449_s25 = scalar_lea.hbm %s527_s0, %s226_s21  ;;  %s91_s26 = scalar_lea.vmem [#allocation2], %s225_s22 }
  0x14   : > { %s98_s27 = sshll.u32 %s91_s26, 4  ;;  %p453_p13 = pnand %p246_p10, %p425_p5  ;;  %s457_s27 = int_to_ptr.vmem [resolvable:$true] %s98_s27 }
  0x15   : > { %s88_s29 = scalar_lea.sflag [#allocation3], %s87_s20  ;;  %s280_s30 = scalar_lea.hbm %s449_s25, 128 }
  0x16   : > { %p281_p2 = scmp.ne.s32.totalorder %s449_s25, %s280_s30  ;;  %p282_p3 = pneg %p453_p13 }
  0x17   : > { %s285_s4 = scalar_lea.hbm %s527_s0, 256  ;;  %p286_p5 = scmp.lt.s32.totalorder %s449_s25, %s527_s0 }
  0x18   : > { %p283_p4 = pnand %p282_p3, %p281_p2  ;;  %p287_p8 = scmp.lt.s32.totalorder %s285_s4, %s280_s30 }
  0x1a   : > { %p284_p7 = pneg %p283_p4  ;;  %p288_p10 = por %p287_p8, %p286_p5 }
  0x1c   : > { %p289_p9 = pnand %p288_p10, %p284_p7 }
  0x1e   : > { %292 = shalt.err (!%p289_p9)
}
  0x1f   : > { %s293_s13 = scalar_lea.vmem %s457_s27, 128  ;;  %s374_s14 = smov [#allocation2]  }
  0x20   : > { %p294_p0 = scmp.ne.s32.totalorder %s457_s27, %s293_s13  ;;  %s298_s16 = sshll.u32 %s374_s14, 4  ;;  %s299_s16 = int_to_ptr.vmem [resolvable:$false] %s298_s16 }
  0x21   : > { %s300_s20 = scalar_lea.vmem %s299_s16, 256  ;;  %p301_p4 = scmp.lt.s32.totalorder %s457_s27, %s299_s16 }
  0x22   : > { %p296_p1 = pnand %p294_p0, %p282_p3  ;;  %p302_p12 = scmp.lt.s32.totalorder %s300_s20, %s293_s13 }
  0x24   : > { %p297_p2 = pneg %p296_p1  ;;  %p303_p11 = por %p302_p12, %p301_p4 }
  0x26   : > { %p304_p6 = pnand %p303_p11, %p297_p2 }
  0x28   : > { %307 = shalt.err (!%p304_p6)
}
  0x29   : > { %241 = dma.hbm_to_vmem [thread:$0]  (!%p453_p13), %s449_s25, 128, %s457_s27, %s88_s29  }
  0x2a   : > { %p536_p9 = scmp.lt.s32.totalorder %s372_s9, 3  ;;  %p537_p7 = scmp.ge.s32.totalorder %s372_s9, 1 }
  0x2c   : > { %p104_p0 = pnand %p537_p7, %p536_p9 }
  0x2d   : > { %s484_s21 = sand.u32 (!%p104_p0), 1, %s364_s7   ;;  %p538_p6 = scmp.ne.s32.totalorder (!%p104_p0), %s532_s17, 0 }
  0x2e   : > { %107 = sbr.rel (%p104_p0) target bundleno = 208 (0xd0), region = 24  ;;  %s228_s22 = sshll.u32 (!%p104_p0), %s484_s21, 3 }
  0x2f   : > { %s110_s23 = scalar_lea.sflag (!%p104_p0), [#allocation3], %s484_s21  ;;  %s113_s24 = scalar_lea.vmem (!%p104_p0), [#allocation2], %s228_s22 }
  0x33   : > { %351 = dma.done.wait (%p538_p6), %s110_s23, 128  }
  0x34   : > { %353 = vsyncadd (%p538_p6), %s110_s23, 4294967168  ;;  %v132_v0 = vld [vmem:[%s113_s24] sm:$0xff]  ;;  %s231_s25 = sshll.u32 %s407_s10, 7  ;;  %s131_s26 = scalar_lea.vmem [#allocation5], %s228_s22 }
  0x35   : > { %133 = vadd.xlane.f32.xlu0 %v132_v0  ;;  %s152_s27 = sshll.u32 %s131_s26, 4  ;;  %s150_s30 = scalar_lea.hbm %s528_s1, %s231_s25  ;;  %s153_s27 = int_to_ptr.vmem [resolvable:$true] %s152_s27 }
  0x36   : > { %s139_s2 = scalar_lea.sflag [#allocation4], %s484_s21  ;;  %s308_s17 = scalar_lea.vmem %s153_s27, 128 }
  0x37   : > { %p309_p11 = scmp.ne.s32.totalorder %s153_s27, %s308_s17  ;;  %p539_p12 = scmp.ne.s32.totalorder %s533_s18, 0 }
  0x38   : > { %s375_s3 = smov [#allocation5]  }
  0x39   : > { %p310_p13 = pnand %p309_p11, %p539_p12  ;;  %s312_s4 = sshll.u32 %s375_s3, 4  ;;  %s313_s4 = int_to_ptr.vmem [resolvable:$false] %s312_s4 }
  0x3a   : > { %s314_s10 = scalar_lea.vmem %s313_s4, 256  ;;  %p315_p3 = scmp.lt.s32.totalorder %s153_s27, %s313_s4 }
  0x3b   : > { %p311_p1 = pneg %p310_p13  ;;  %p316_p5 = scmp.lt.s32.totalorder %s314_s10, %s308_s17 }
  0x3d   : > { %p317_p8 = por %p316_p5, %p315_p3 }
  0x3f   : > { %p318_p10 = pnand %p317_p8, %p311_p1 }
  0xbe   : > { %v134_v1 = vpop.xlane.xlu0 %133 }
  0xbf   : > { %v135_v2 = vmul.f32 0.0078125, %v134_v1 }
  0xc1   : > { %v136_v3 = vsub.f32 %v132_v0, %v135_v2 }
  0xc3   : > { %137 = vst [vmem:[%s131_s26] sm:$0xff] %v136_v3 }
  0xc4   : > { %321 = shalt.err (!%p318_p10)
}
  0xc5   : > { %s322_s5 = scalar_lea.hbm %s150_s30, 128  ;;  %s326_s14 = scalar_lea.hbm %s528_s1, 256 }
  0xc6   : > { %p323_p2 = scmp.ne.s32.totalorder %s150_s30, %s322_s5  ;;  %p327_p7 = scmp.lt.s32.totalorder %s150_s30, %s528_s1 }
  0xc7   : > { %p328_p0 = scmp.lt.s32.totalorder %s326_s14, %s322_s5 }
  0xc8   : > { %p324_p4 = pnand %p323_p2, %p539_p12 }
  0xc9   : > { %p329_p6 = por %p328_p0, %p327_p7 }
  0xca   : > { %p325_p9 = pneg %p324_p4 }
  0xcc   : > { %p330_p11 = pnand %p329_p6, %p325_p9 }
  0xce   : > { %333 = shalt.err (!%p330_p11)
}
  0xcf   : > { %236 = dma.vmem_to_hbm [thread:$0]  (%p539_p12), %s153_s27, 128, %s150_s30, %s139_s2  }
  0xd0 PF: > { %s164_s21 = sand.u32 1, %s360_s6   ;;  %p540_p13 = scmp.ne.s32.totalorder %s534_s19, 0 }
  0xd1   : > { %p541_p1 = scmp.ge.s32.totalorder %s372_s9, 2  ;;  %s165_s22 = scalar_lea.sflag [#allocation4], %s164_s21 }
  0xd3   : > { %p243_p3 = pnand %p541_p1, %p540_p13 }
  0xd5   : > { %p244_p5 = pneg %p243_p3 }
  0xd7   : > { %355 = dma.done.wait (%p244_p5), %s165_s22, 128  }
  0xd8   : > { %357 = vsyncadd (%p244_p5), %s165_s22, 4294967168  ;;  %p14_p8 = scmp.ge.s32.totalorder %s411_s12, 4   ;;  %s542_s6 = smov %s364_s7 }
  0xd9   : > { %s543_s7 = smov %s368_s8  ;;  %s544_s8 = smov %s423_s15 }
  0xda   : > { %s545_s9 = smov %s411_s12  ;;  %16 = sbr.rel (!%p14_p8) target bundleno = 5 (0x5), region = 69 }
  0xdf   :  { %170 = vsyncpa [#allocation3], 1 }
  0xe0   :  { %172 = vsyncpa [#allocation3 + $0x1], 1 }
  0xe1   :  { %173 = vsyncpa [#allocation4], 1 }
  0xe2   :  { %175 = vsyncpa [#allocation4 + $0x1], 1 }

</bundles_post_ra>
